<compile_context>
chip_gen: v7x
topology: tpu7x:2x2x1
jax: 0.10.0
libtpu: 0.0.40
codegen_flags: <defaults>
</compile_context>

<pallas_src>
import jax
import jax.numpy as jnp
import numpy as np
from jax.experimental import pallas as pl
from jax.experimental.pallas import tpu as pltpu

POOL_SIZE = 3  # kernel is specialized for the module default (3x3)


def _make_const_maps(H, W):
    """(5, H*W) f32 constants: [left_ok, right_ok, up_ok, down_ok, 1/valid_count]."""
    lane = jnp.arange(H * W)
    col = lane % W
    row = lane // W
    lf = (col != 0).astype(jnp.float32)        # has a left neighbor
    rt = (col != W - 1).astype(jnp.float32)    # has a right neighbor
    up = (row != 0).astype(jnp.float32)        # has a row above
    dn = (row != H - 1).astype(jnp.float32)    # has a row below
    cnt = (1.0 + up + dn) * (1.0 + lf + rt)    # valid taps per 3x3 window (4/6/9)
    return jnp.stack([lf, rt, up, dn, 1.0 / cnt], axis=0)


def _choose_tb(num_planes, plane_bytes, target_bytes=1 << 20):
    """Planes per block: divides num_planes, obeys the sublane rule (multiple of 8
    or the full extent), fits ~target_bytes, and prefers leaving >= 2 grid steps
    so both TensorCores get work on megacore parts (v7x)."""
    cands = [d for d in range(1, num_planes + 1)
             if num_planes % d == 0 and (d % 8 == 0 or d == num_planes)]
    fitting = [d for d in cands if d * plane_bytes <= target_bytes]
    if not fitting:
        return min(cands)
    multi = [d for d in fitting if num_planes // d >= 2]
    return max(multi) if multi else max(fitting)


def pooling_forward(x):
    """x: (N, C, H, W) -> AvgPool2d(3, stride=1, pad=1, count_include_pad=False)(x) - x"""
    N, C, H, W = x.shape
    P = N * C
    HW = H * W
    xf = x.reshape(P, HW)                       # free reshape: plane -> lane axis

    tb = _choose_tb(P, HW * x.dtype.itemsize)
    consts = _make_const_maps(H, W)

    def kernel(c_ref, x_ref, o_ref):
        xv = x_ref[...].astype(jnp.float32)      # (TB, HW)
        lf = c_ref[0:1, :]                       # (1, HW), broadcast over sublanes
        rt = c_ref[1:2, :]
        up = c_ref[2:3, :]
        dn = c_ref[3:4, :]
        inv_cnt = c_ref[4:5, :]

        # within-row 3-tap sum (zero-padded borders handled by masks)
        v = (xv
             + pltpu.roll(xv, shift=1, axis=1) * lf
             + pltpu.roll(xv, shift=(HW - 1) % HW, axis=1) * rt)
        # across-row 3-tap sum: row neighbors live +/- W lanes away in the plane
        s = (v
             + pltpu.roll(v, shift=W % HW, axis=1) * up
             + pltpu.roll(v, shift=(HW - W) % HW, axis=1) * dn)
        # count_include_pad=False: multiply by the precomputed exact 1/count map
        o_ref[...] = (s * inv_cnt - xv).astype(o_ref.dtype)

    out = pl.pallas_call(
        kernel,
        out_shape=jax.ShapeDtypeStruct((P, HW), x.dtype),
        grid_spec=pltpu.PrefetchScalarGridSpec(
            num_scalar_prefetch=0,
            grid=(P // tb,),
            in_specs=[
                pl.BlockSpec((5, HW), lambda i: (0, 0)),     # resident constants
                pl.BlockSpec((tb, HW), lambda i: (i, 0)),
            ],
            out_specs=pl.BlockSpec((tb, HW), lambda i: (i, 0)),
        ),
        compiler_params=pltpu.CompilerParams(
            dimension_semantics=("parallel",),
            vmem_limit_bytes=32 * 1024 * 1024,   # v7x-safe; blocks capped ~1 MiB
        ),
    )(consts, xf)
    return out.reshape(N, C, H, W)


def _reference(x):
    # pure-JAX reference: 3x3 avg pool, stride 1, pad 1, count_include_pad=False
    N, C, H, W = x.shape
    xp = jnp.pad(x, ((0, 0), (0, 0), (1, 1), (1, 1)))
    op = jnp.pad(jnp.ones_like(x), ((0, 0), (0, 0), (1, 1), (1, 1)))
    s = jnp.zeros_like(x)
    c = jnp.zeros_like(x)
    for di in range(3):
        for dj in range(3):
            s = s + xp[:, :, di:di + H, dj:dj + W]
            c = c + op[:, :, di:di + H, dj:dj + W]
    return s / c - x


if __name__ == "__main__":
    key = jax.random.PRNGKey(0)
    x = jax.random.normal(key, (2, 4, 16, 16), dtype=jnp.float32)

    out = pooling_forward(x)
    jax.block_until_ready(out)

    ref = _reference(x)
    np.testing.assert_allclose(np.asarray(out), np.asarray(ref),
                               rtol=1e-5, atol=1e-5)
    print("KERNEL_OK")
</pallas_src>

<mosaic_0001>
module attributes {stable_mosaic.version = 11 : i64} {
  func.func @kernel(%arg0: i32, %arg1: memref<5x256xf32, #tpu.memory_space<vmem>>, %arg2: memref<8x256xf32, #tpu.memory_space<vmem>>, %arg3: memref<8x256xf32, #tpu.memory_space<vmem>>) attributes {dimension_semantics = [#tpu.dimension_semantics<parallel>], iteration_bounds = array<i64: 1>, scalar_prefetch = 0 : i64, scratch_operands = 0 : i64, tpu.core_type = #tpu.core_type<tc>, window_params = [{pipeline_mode = #tpu.pipeline_mode<synchronous>, transform_indices = @transform_0, window_bounds = array<i64: 5, 256>}, {transform_indices = @transform_1, window_bounds = array<i64: 8, 256>}, {transform_indices = @transform_2, window_bounds = array<i64: 8, 256>}]} {
    %c0 = arith.constant 0 : index
    %c0_0 = arith.constant 0 : index
    %0 = vector.load %arg2[%c0, %c0_0] : memref<8x256xf32, #tpu.memory_space<vmem>>, vector<8x256xf32>
    %c0_1 = arith.constant 0 : index
    %c0_2 = arith.constant 0 : index
    %1 = vector.load %arg1[%c0_1, %c0_2] : memref<5x256xf32, #tpu.memory_space<vmem>>, vector<1x256xf32>
    %c1 = arith.constant 1 : index
    %c0_3 = arith.constant 0 : index
    %2 = vector.load %arg1[%c1, %c0_3] : memref<5x256xf32, #tpu.memory_space<vmem>>, vector<1x256xf32>
    %c2 = arith.constant 2 : index
    %c0_4 = arith.constant 0 : index
    %3 = vector.load %arg1[%c2, %c0_4] : memref<5x256xf32, #tpu.memory_space<vmem>>, vector<1x256xf32>
    %c3 = arith.constant 3 : index
    %c0_5 = arith.constant 0 : index
    %4 = vector.load %arg1[%c3, %c0_5] : memref<5x256xf32, #tpu.memory_space<vmem>>, vector<1x256xf32>
    %c4 = arith.constant 4 : index
    %c0_6 = arith.constant 0 : index
    %5 = vector.load %arg1[%c4, %c0_6] : memref<5x256xf32, #tpu.memory_space<vmem>>, vector<1x256xf32>
    %c1_i32 = arith.constant 1 : i32
    %6 = tpu.dynamic_rotate %0 by %c1_i32 dim 1 : vector<8x256xf32>, i32 -> vector<8x256xf32>
    %7 = vector.broadcast %1 : vector<1x256xf32> to vector<8x256xf32>
    %8 = arith.mulf %6, %7 : vector<8x256xf32>
    %9 = arith.addf %0, %8 : vector<8x256xf32>
    %c255_i32 = arith.constant 255 : i32
    %10 = tpu.dynamic_rotate %0 by %c255_i32 dim 1 : vector<8x256xf32>, i32 -> vector<8x256xf32>
    %11 = vector.broadcast %2 : vector<1x256xf32> to vector<8x256xf32>
    %12 = arith.mulf %10, %11 : vector<8x256xf32>
    %13 = arith.addf %9, %12 : vector<8x256xf32>
    %c16_i32 = arith.constant 16 : i32
    %14 = tpu.dynamic_rotate %13 by %c16_i32 dim 1 : vector<8x256xf32>, i32 -> vector<8x256xf32>
    %15 = vector.broadcast %3 : vector<1x256xf32> to vector<8x256xf32>
    %16 = arith.mulf %14, %15 : vector<8x256xf32>
    %17 = arith.addf %13, %16 : vector<8x256xf32>
    %c240_i32 = arith.constant 240 : i32
    %18 = tpu.dynamic_rotate %13 by %c240_i32 dim 1 : vector<8x256xf32>, i32 -> vector<8x256xf32>
    %19 = vector.broadcast %4 : vector<1x256xf32> to vector<8x256xf32>
    %20 = arith.mulf %18, %19 : vector<8x256xf32>
    %21 = arith.addf %17, %20 : vector<8x256xf32>
    %22 = vector.broadcast %5 : vector<1x256xf32> to vector<8x256xf32>
    %23 = arith.mulf %21, %22 : vector<8x256xf32>
    %24 = arith.subf %23, %0 : vector<8x256xf32>
    %c0_7 = arith.constant 0 : index
    %c0_8 = arith.constant 0 : index
    %25 = vector.load %arg3[%c0_7, %c0_8] : memref<8x256xf32, #tpu.memory_space<vmem>>, vector<8x256xf32>
    tpu.vector_store %arg3[%c0_7, %c0_8], %24 {strides = array<i32>} : memref<8x256xf32, #tpu.memory_space<vmem>>, vector<8x256xf32>,
    return
  }
  func.func @transform_0(%arg0: i32) -> (i32, i32) {
    %c0_i32 = arith.constant 0 : i32
    %c0_i32_0 = arith.constant 0 : i32
    %c0_i32_1 = arith.constant 0 : i32
    return %c0_i32, %c0_i32_0 : i32, i32
  }
  func.func @transform_1(%arg0: i32) -> (i32, i32) {
    %c0_i32 = arith.constant 0 : i32
    %c0_i32_0 = arith.constant 0 : i32
    return %arg0, %c0_i32 : i32, i32
  }
  func.func @transform_2(%arg0: i32) -> (i32, i32) {
    %c0_i32 = arith.constant 0 : i32
    %c0_i32_0 = arith.constant 0 : i32
    return %arg0, %c0_i32 : i32, i32
  }
}

</mosaic_0001>

<bundles_post_ra>
// kernel: tpu_custom_call.1
= control target key start
LH: loop header
LB: loop body
LE: loop exit
PB: predicated region body
PF: predicated region fallthrough
CT: control target
= control target key end

     0   :  { %7 = vsyncpa [#allocation3], 0  ;;  %s319_s0 = inlined_call_operand.hbm [shape: f32[5,256], index: 0, kind: input, shape index: {}]   ;;  %s320_s1 = inlined_call_operand.hbm [shape: f32[8,256], index: 1, kind: input, shape index: {}]   ;;  %s321_s2 = inlined_call_operand.hbm [shape: f32[8,256], index: 2, kind: output, shape index: {}]  }
   0x1   :  { %8 = vsyncpa [#allocation6], 0 }
   0x2   :  { %9 = vsyncpa [#allocation4], 0  ;;  %s249_s9 = smov [#allocation2]   ;;  %s250_s11 = smov [#allocation5]  }
   0x3   :  { %s16_s10 = sshll.u32 %s249_s9, 4  ;;  %s26_s12 = sshll.u32 %s250_s11, 4  ;;  %s17_s10 = int_to_ptr.vmem [resolvable:$true] %s16_s10  ;;  %s27_s12 = int_to_ptr.vmem [resolvable:$true] %s26_s12 }
   0x4   :  { %s177_s15 = scalar_lea.hbm %s319_s0, 256 }
   0x5   :  { %p178_p0 = scmp.ne.s32.totalorder %s319_s0, %s177_s15  ;;  %p181_p1 = scmp.lt.u32.totalorder %s177_s15, %s319_s0 }
   0x7   :  { %p183_p2 = pnand %p181_p1, %p178_p0 }
   0x9   :  { %186 = shalt.err (!%p183_p2)
}
   0xa   :  { %s187_s20 = scalar_lea.vmem %s17_s10, 256  ;;  %p192_p4 = scmp.lt.s32.totalorder %s17_s10, %s17_s10 }
   0xb   :  { %p188_p3 = scmp.ne.s32.totalorder %s17_s10, %s187_s20  ;;  %p193_p5 = scmp.lt.s32.totalorder %s187_s20, %s187_s20 }
   0xd   :  { %p194_p6 = por %p193_p5, %p192_p4 }
   0xf   :  { %p195_p7 = pnand %p194_p6, %p188_p3 }
  0x11   :  { %198 = shalt.err (!%p195_p7)
}
  0x12   :  { %19 = dma.hbm_to_vmem [thread:$0]  %s319_s0, 256, %s17_s10, [#allocation3]  }
  0x13   :  { %s199_s25 = scalar_lea.hbm %s320_s1, 256 }
  0x14   :  { %p200_p8 = scmp.ne.s32.totalorder %s320_s1, %s199_s25  ;;  %p203_p9 = scmp.lt.u32.totalorder %s199_s25, %s320_s1 }
  0x16   :  { %p205_p10 = pnand %p203_p9, %p200_p8 }
  0x18   :  { %208 = shalt.err (!%p205_p10)
}
  0x19   :  { %s209_s30 = scalar_lea.vmem %s27_s12, 256  ;;  %p214_p12 = scmp.lt.s32.totalorder %s27_s12, %s27_s12 }
  0x1a   :  { %p210_p11 = scmp.ne.s32.totalorder %s27_s12, %s209_s30  ;;  %p215_p13 = scmp.lt.s32.totalorder %s209_s30, %s209_s30 }
  0x1c   :  { %p216_p0 = por %p215_p13, %p214_p12 }
  0x1e   :  { %p217_p1 = pnand %p216_p0, %p210_p11 }
  0x20   :  { %220 = shalt.err (!%p217_p1)
}
  0x21   :  { %29 = dma.hbm_to_vmem [thread:$0]  %s320_s1, 256, %s27_s12, [#allocation6]  }
  0x22   :  { %243 = dma.done.wait [#allocation3], 256  }
  0x23   :  { %244 = vsyncadd [#allocation3], 4294967040 }
  0x24   :  { %245 = dma.done.wait [#allocation6], 256  }
  0x25   :  { %246 = vsyncadd [#allocation6], 4294967040  ;;  %v295_v0 = vld [vmem:[#allocation5] sm:$0xff]  ;;  %s251_s4 = smov 127   ;;  %s252_s5 = smov 1   ;;  %v299_v1 = vld [vmem:[#allocation5 + $0x8] sm:$0xff]  ;;  %v51_v2 = vlaneseq }
  0x26   :  { %71 = vrot.lane.b32.xlu1 %v295_v0, %s251_s4  ;;  %47 = vrot.lane.b32.xlu0 %v295_v0, %s252_s5  ;;  %v38_v7 = vld [vmem:[#allocation2] ss:$8 sm:$0x3]  ;;  %v40_v10 = vld [vmem:[#allocation2 + $0x1] ss:$8 sm:$0x3] }
  0x27   :  { %v58_v3 = vshrl.u32 %v51_v2, 7  ;;  %v52_v4 = vand.u32 127, %v51_v2  ;;  %s253_s1 = smov 16   ;;  %s254_s6 = smov 112  }
  0x28   :  { %v42_v29 = vld [vmem:[#allocation2 + $0x2] ss:$8 sm:$0x3]  ;;  %v44_v32 = vld [vmem:[#allocation2 + $0x3] ss:$8 sm:$0x3] }
  0x29   :  { %v59_v5 = vsub.s32 0, %v58_v3  ;;  %v63_v6 = vsub.s32 1, %v58_v3  ;;  %vm75_vm0 = vcmp.lt.s32.totalorder %v52_v4, 127  ;;  %vm53_vm1 = vcmp.lt.s32.totalorder %v52_v4, 1  ;;  %s255_s7 = smov [#allocation7]  }
  0x2a   :  { %73 = vrot.lane.b32.xlu1 %v299_v1, %s251_s4  ;;  %49 = vrot.lane.b32.xlu0 %v299_v1, %s252_s5  ;;  %vm97_vm2 = vcmp.lt.s32.totalorder %v52_v4, 16  ;;  %vm119_vm3 = vcmp.lt.s32.totalorder %v52_v4, 112  ;;  %v46_v39 = vld [vmem:[#allocation2 + $0x4] ss:$8 sm:$0x3]  ;;  %s160_s8 = sshll.u32 %s255_s7, 4  ;;  %s161_s8 = int_to_ptr.vmem [resolvable:$true] %s160_s8 }
  0x2b   :  { %v60_v11 = vrot.slane %v38_v7, %v59_v5  ;;  %v64_v12 = vrot.slane %v38_v7, %v63_v6  ;;  %v82_v13 = vrot.slane %v40_v10, %v59_v5  ;;  %v86_v14 = vrot.slane %v40_v10, %v63_v6  ;;  %s221_s9 = scalar_lea.vmem %s161_s8, 256  ;;  %p226_p3 = scmp.lt.s32.totalorder %s161_s8, %s161_s8 }
  0x2c   :  { %v104_v30 = vrot.slane %v42_v29, %v59_v5  ;;  %v108_v31 = vrot.slane %v42_v29, %v63_v6  ;;  %v126_v40 = vrot.slane %v44_v32, %v59_v5  ;;  %v130_v41 = vrot.slane %v44_v32, %v63_v6  ;;  %p222_p2 = scmp.ne.s32.totalorder %s161_s8, %s221_s9  ;;  %p227_p4 = scmp.lt.s32.totalorder %s221_s9, %s221_s9 }
  0x2d   :  { %v141_v44 = vrot.slane %v46_v39, %v59_v5  ;;  %v145_v45 = vrot.slane %v46_v39, %v63_v6 }
  0x2e   :  { %p228_p5 = por %p227_p4, %p226_p3 }
  0x30   :  { %p229_p6 = pnand %p228_p5, %p222_p2 }
  0x98   :  { %v72_v8 = vpop.permute.xlu1 %71  ;;  %v48_v9 = vpop.permute.xlu0 %47 }
  0x9c   :  { %v74_v15 = vpop.permute.xlu1 %73  ;;  %v50_v16 = vpop.permute.xlu0 %49 }
  0x9d   :  { %v76_v17 = vsel %vm75_vm0, %v72_v8, %v74_v15  ;;  %v77_v18 = vsel %vm75_vm0, %v74_v15, %v72_v8  ;;  %v54_v19 = vsel %vm53_vm1, %v48_v9, %v50_v16  ;;  %v55_v20 = vsel %vm53_vm1, %v50_v16, %v48_v9 }
  0x9e   :  { %v67_v21 = vmul.f32 %v60_v11, %v55_v20  ;;  %v68_v22 = vmul.f32 %v64_v12, %v54_v19  ;;  %v89_v23 = vmul.f32 %v82_v13, %v76_v17  ;;  %v90_v24 = vmul.f32 %v86_v14, %v77_v18 }
  0xa0   :  { %v69_v25 = vadd.f32 %v67_v21, %v295_v0  ;;  %v70_v26 = vadd.f32 %v68_v22, %v299_v1 }
  0xa2   :  { %v91_v27 = vadd.f32 %v89_v23, %v69_v25  ;;  %v92_v28 = vadd.f32 %v90_v24, %v70_v26 }
  0xa4   :  { %93 = vrot.lane.b32.xlu0 %v91_v27, %s253_s1  ;;  %95 = vrot.lane.b32.xlu1 %v92_v28, %s253_s1 }
  0xa8   :  { %115 = vrot.lane.b32.xlu0 %v91_v27, %s254_s6  ;;  %117 = vrot.lane.b32.xlu1 %v92_v28, %s254_s6 }
 0x116   :  { %v94_v33 = vpop.permute.xlu0 %93  ;;  %v96_v34 = vpop.permute.xlu1 %95 }
 0x117   :  { %v98_v35 = vsel %vm97_vm2, %v94_v33, %v96_v34  ;;  %v99_v36 = vsel %vm97_vm2, %v96_v34, %v94_v33 }
 0x118   :  { %v111_v37 = vmul.f32 %v104_v30, %v99_v36  ;;  %v112_v38 = vmul.f32 %v108_v31, %v98_v35 }
 0x11a   :  { %v116_v42 = vpop.permute.xlu0 %115  ;;  %v118_v43 = vpop.permute.xlu1 %117  ;;  %v113_v48 = vadd.f32 %v111_v37, %v91_v27  ;;  %v114_v49 = vadd.f32 %v112_v38, %v92_v28 }
 0x11b   :  { %v120_v46 = vsel %vm119_vm3, %v116_v42, %v118_v43  ;;  %v121_v47 = vsel %vm119_vm3, %v118_v43, %v116_v42 }
 0x11c   :  { %v133_v50 = vmul.f32 %v126_v40, %v120_v46  ;;  %v134_v51 = vmul.f32 %v130_v41, %v121_v47 }
 0x11e   :  { %v135_v52 = vadd.f32 %v133_v50, %v113_v48  ;;  %v136_v53 = vadd.f32 %v134_v51, %v114_v49 }
 0x120   :  { %v148_v54 = vmul.f32 %v141_v44, %v135_v52  ;;  %v149_v55 = vmul.f32 %v145_v45, %v136_v53 }
 0x122   :  { %v150_v56 = vsub.f32 %v148_v54, %v295_v0  ;;  %v151_v57 = vsub.f32 %v149_v55, %v299_v1 }
 0x124   :  { %152 = vst [vmem:[#allocation7] sm:$0xff] %v150_v56  ;;  %153 = vst [vmem:[#allocation7 + $0x8] sm:$0xff] %v151_v57 }
 0x125   :  { %232 = shalt.err (!%p229_p6)
}
 0x126   :  { %s233_s12 = scalar_lea.hbm %s321_s2, 256 }
 0x127   :  { %p234_p7 = scmp.ne.s32.totalorder %s321_s2, %s233_s12  ;;  %p237_p8 = scmp.lt.u32.totalorder %s233_s12, %s321_s2 }
 0x129   :  { %p239_p9 = pnand %p237_p8, %p234_p7 }
 0x12b   :  { %242 = shalt.err (!%p239_p9)
}
 0x12c   :  { %163 = dma.vmem_to_hbm [thread:$0]  %s161_s8, 256, %s321_s2, [#allocation4]  }
 0x12d   :  { %247 = dma.done.wait [#allocation4], 256  }
 0x12e   :  { %248 = vsyncadd [#allocation4], 4294967040 }
 0x12f   :  { %167 = vsyncpa [#allocation3], 1 }
 0x130   :  { %168 = vsyncpa [#allocation6], 1 }
 0x131   :  { %169 = vsyncpa [#allocation4], 1 }

</bundles_post_ra>
